<compile_context>
chip_gen: v7x
topology: tpu7x:2x2x1
jax: 0.10.0
libtpu: 0.0.40
codegen_flags: <defaults>
</compile_context>

<pallas_src>
import functools

import jax
import jax.numpy as jnp
from jax.experimental import pallas as pl
from jax.experimental.pallas import tpu as pltpu


# Layer dims (in_features, out_features) and 8-aligned row offsets of each
# weight matrix inside the packed parameter array.
_DIMS = [(27, 13), (13, 6), (6, 3), (3, 2)]
_ROW_OFF = [0, 32, 48, 56]
_W_ROWS = 64          # total packed rows (8-aligned)
_PACK_COLS = 16       # >= max out_features (13)


def _round_up(n, m):
    return ((n + m - 1) // m) * m


def _mlp_kernel(x_ref, w_ref, b_ref, o_ref):
    h = x_ref[...]                                # (blk, 27) f32

    # Layer 1: 27 -> 13, ReLU
    w1 = w_ref[0:27, 0:13]
    b1 = b_ref[0:1, 0:13]
    h = jnp.maximum(jnp.dot(h, w1, preferred_element_type=jnp.float32) + b1, 0.0)

    # Layer 2: 13 -> 6, ReLU
    w2 = w_ref[32:45, 0:6]
    b2 = b_ref[1:2, 0:6]
    h = jnp.maximum(jnp.dot(h, w2, preferred_element_type=jnp.float32) + b2, 0.0)

    # Layer 3: 6 -> 3, ReLU
    w3 = w_ref[48:54, 0:3]
    b3 = b_ref[2:3, 0:3]
    h = jnp.maximum(jnp.dot(h, w3, preferred_element_type=jnp.float32) + b3, 0.0)

    # Layer 4: 3 -> 2 (no activation)
    w4 = w_ref[56:59, 0:2]
    b4 = b_ref[3:4, 0:2]
    h = jnp.dot(h, w4, preferred_element_type=jnp.float32) + b4

    o_ref[...] = h.astype(o_ref.dtype)


@functools.partial(jax.jit, static_argnames=("tile_b",))
def mlp_forward(x, w_pack, b_pack, tile_b=512):
    """x: (B, 27) float32.  w_pack: (64, 16) packed weights.  b_pack: (4, 16)."""
    B, D_in = x.shape
    assert D_in == _DIMS[0][0], f"expected {_DIMS[0][0]} input features, got {D_in}"
    D_out = _DIMS[-1][1]

    # Single block for small batches; large batches are tiled (tile_b rows,
    # multiple of 8) so the grid has multiple "parallel" steps (v7x 2-TC).
    blk = min(tile_b, _round_up(B, 8))
    grid = (pl.cdiv(B, blk),)

    return pl.pallas_call(
        _mlp_kernel,
        out_shape=jax.ShapeDtypeStruct((B, D_out), x.dtype),
        grid_spec=pltpu.PrefetchScalarGridSpec(
            num_scalar_prefetch=0,
            grid=grid,
            in_specs=[
                pl.BlockSpec((blk, D_in), lambda i: (i, 0)),
                pl.BlockSpec(w_pack.shape, lambda i: (0, 0)),
                pl.BlockSpec(b_pack.shape, lambda i: (0, 0)),
            ],
            out_specs=pl.BlockSpec((blk, D_out), lambda i: (i, 0)),
        ),
        compiler_params=pltpu.CompilerParams(
            dimension_semantics=("parallel",)),
    )(x, w_pack, b_pack)


def init_params(key):
    """Deterministic init mimicking nn.Linear default (uniform +/- 1/sqrt(fan_in)).
    Weights stored pre-transposed as (in, out); biases as (1, out)."""
    params = {}
    keys = jax.random.split(key, 2 * len(_DIMS))
    for idx, (d_in, d_out) in enumerate(_DIMS):
        bound = 1.0 / jnp.sqrt(jnp.float32(d_in))
        w = jax.random.uniform(keys[2 * idx], (d_in, d_out),
                               minval=-bound, maxval=bound, dtype=jnp.float32)
        b = jax.random.uniform(keys[2 * idx + 1], (1, d_out),
                               minval=-bound, maxval=bound, dtype=jnp.float32)
        params[f"w{idx + 1}"] = w
        params[f"b{idx + 1}"] = b
    return params


def pack_params(params):
    """Pack all weights/biases into two small lane-padded arrays (done once,
    host-side) so the kernel has only two constant parameter streams."""
    w_pack = jnp.zeros((_W_ROWS, _PACK_COLS), jnp.float32)
    b_pack = jnp.zeros((len(_DIMS), _PACK_COLS), jnp.float32)
    for idx, (d_in, d_out) in enumerate(_DIMS):
        r = _ROW_OFF[idx]
        w_pack = w_pack.at[r:r + d_in, :d_out].set(params[f"w{idx + 1}"])
        b_pack = b_pack.at[idx, :d_out].set(params[f"b{idx + 1}"][0])
    return w_pack, b_pack


def mlp_reference(x, params):
    h = x
    for i in range(1, 5):
        h = h @ params[f"w{i}"] + params[f"b{i}"]
        if i < 4:
            h = jnp.maximum(h, 0.0)
    return h


if __name__ == "__main__":
    key = jax.random.PRNGKey(0)
    k_params, k_x1, k_x2 = jax.random.split(key, 3)

    params = init_params(k_params)
    w_pack, b_pack = pack_params(params)

    # Small demo batch (matches the module's 27-feature input).
    x = jax.random.normal(k_x1, (8, 27), dtype=jnp.float32)
    out = mlp_forward(x, w_pack, b_pack)
    jax.block_until_ready(out)
    ref = mlp_reference(x, params)
    assert out.shape == (8, 2), out.shape
    assert jnp.allclose(out, ref, atol=1e-5, rtol=1e-5), "mismatch vs reference (B=8)"

    # Ragged, multi-step grid check (exercises masked last block, no jnp.pad).
    x2 = jax.random.normal(k_x2, (300, 27), dtype=jnp.float32)
    out2 = mlp_forward(x2, w_pack, b_pack, tile_b=128)
    jax.block_until_ready(out2)
    ref2 = mlp_reference(x2, params)
    assert out2.shape == (300, 2), out2.shape
    assert jnp.allclose(out2, ref2, atol=1e-5, rtol=1e-5), "mismatch vs reference (B=300)"

    print("KERNEL_OK")
</pallas_src>

<mosaic_0001>
module attributes {stable_mosaic.version = 11 : i64} {
  func.func @_mlp_kernel(%arg0: i32, %arg1: memref<8x27xf32, #tpu.memory_space<vmem>>, %arg2: memref<64x16xf32, #tpu.memory_space<vmem>>, %arg3: memref<4x16xf32, #tpu.memory_space<vmem>>, %arg4: memref<8x2xf32, #tpu.memory_space<vmem>>) attributes {dimension_semantics = [#tpu.dimension_semantics<parallel>], iteration_bounds = array<i64: 1>, scalar_prefetch = 0 : i64, scratch_operands = 0 : i64, tpu.core_type = #tpu.core_type<tc>, window_params = [{transform_indices = @transform_0, window_bounds = array<i64: 8, 27>}, {pipeline_mode = #tpu.pipeline_mode<synchronous>, transform_indices = @transform_1, window_bounds = array<i64: 64, 16>}, {pipeline_mode = #tpu.pipeline_mode<synchronous>, transform_indices = @transform_2, window_bounds = array<i64: 4, 16>}, {transform_indices = @transform_3, window_bounds = array<i64: 8, 2>}]} {
    %c0 = arith.constant 0 : index
    %c0_0 = arith.constant 0 : index
    %0 = vector.load %arg1[%c0, %c0_0] : memref<8x27xf32, #tpu.memory_space<vmem>>, vector<8x27xf32>
    %c0_1 = arith.constant 0 : index
    %c0_2 = arith.constant 0 : index
    %1 = vector.load %arg2[%c0_1, %c0_2] : memref<64x16xf32, #tpu.memory_space<vmem>>, vector<27x13xf32>
    %c0_3 = arith.constant 0 : index
    %c0_4 = arith.constant 0 : index
    %2 = vector.load %arg3[%c0_3, %c0_4] : memref<4x16xf32, #tpu.memory_space<vmem>>, vector<1x13xf32>
    %cst = arith.constant dense<0.000000e+00> : vector<8x13xf32>
    %3 = tpu.matmul %0, %1, %cst {dimension_numbers = #tpu.dot_dimension_numbers<[1], [0], [0], [1], [0, 0, 1, 1], [], []>} : vector<8x27xf32>, vector<27x13xf32>, vector<8x13xf32> -> vector<8x13xf32>
    %4 = vector.broadcast %2 : vector<1x13xf32> to vector<8x13xf32>
    %5 = arith.addf %3, %4 : vector<8x13xf32>
    %cst_5 = arith.constant 0.000000e+00 : f32
    %6 = vector.broadcast %cst_5 : f32 to vector<8x13xf32>
    %7 = arith.maximumf %5, %6 : vector<8x13xf32>
    %c32 = arith.constant 32 : index
    %c0_6 = arith.constant 0 : index
    %8 = vector.load %arg2[%c32, %c0_6] : memref<64x16xf32, #tpu.memory_space<vmem>>, vector<13x6xf32>
    %c1 = arith.constant 1 : index
    %c0_7 = arith.constant 0 : index
    %9 = vector.load %arg3[%c1, %c0_7] : memref<4x16xf32, #tpu.memory_space<vmem>>, vector<1x6xf32>
    %cst_8 = arith.constant dense<0.000000e+00> : vector<8x6xf32>
    %10 = tpu.matmul %7, %8, %cst_8 {dimension_numbers = #tpu.dot_dimension_numbers<[1], [0], [0], [1], [0, 0, 1, 1], [], []>} : vector<8x13xf32>, vector<13x6xf32>, vector<8x6xf32> -> vector<8x6xf32>
    %11 = vector.broadcast %9 : vector<1x6xf32> to vector<8x6xf32>
    %12 = arith.addf %10, %11 : vector<8x6xf32>
    %cst_9 = arith.constant 0.000000e+00 : f32
    %13 = vector.broadcast %cst_9 : f32 to vector<8x6xf32>
    %14 = arith.maximumf %12, %13 : vector<8x6xf32>
    %c48 = arith.constant 48 : index
    %c0_10 = arith.constant 0 : index
    %15 = vector.load %arg2[%c48, %c0_10] : memref<64x16xf32, #tpu.memory_space<vmem>>, vector<6x3xf32>
    %c2 = arith.constant 2 : index
    %c0_11 = arith.constant 0 : index
    %16 = vector.load %arg3[%c2, %c0_11] : memref<4x16xf32, #tpu.memory_space<vmem>>, vector<1x3xf32>
    %cst_12 = arith.constant dense<0.000000e+00> : vector<8x3xf32>
    %17 = tpu.matmul %14, %15, %cst_12 {dimension_numbers = #tpu.dot_dimension_numbers<[1], [0], [0], [1], [0, 0, 1, 1], [], []>} : vector<8x6xf32>, vector<6x3xf32>, vector<8x3xf32> -> vector<8x3xf32>
    %18 = vector.broadcast %16 : vector<1x3xf32> to vector<8x3xf32>
    %19 = arith.addf %17, %18 : vector<8x3xf32>
    %cst_13 = arith.constant 0.000000e+00 : f32
    %20 = vector.broadcast %cst_13 : f32 to vector<8x3xf32>
    %21 = arith.maximumf %19, %20 : vector<8x3xf32>
    %c56 = arith.constant 56 : index
    %c0_14 = arith.constant 0 : index
    %22 = vector.load %arg2[%c56, %c0_14] : memref<64x16xf32, #tpu.memory_space<vmem>>, vector<3x2xf32>
    %c3 = arith.constant 3 : index
    %c0_15 = arith.constant 0 : index
    %23 = vector.load %arg3[%c3, %c0_15] : memref<4x16xf32, #tpu.memory_space<vmem>>, vector<1x2xf32>
    %cst_16 = arith.constant dense<0.000000e+00> : vector<8x2xf32>
    %24 = tpu.matmul %21, %22, %cst_16 {dimension_numbers = #tpu.dot_dimension_numbers<[1], [0], [0], [1], [0, 0, 1, 1], [], []>} : vector<8x3xf32>, vector<3x2xf32>, vector<8x2xf32> -> vector<8x2xf32>
    %25 = vector.broadcast %23 : vector<1x2xf32> to vector<8x2xf32>
    %26 = arith.addf %24, %25 : vector<8x2xf32>
    %c0_17 = arith.constant 0 : index
    %c0_18 = arith.constant 0 : index
    %27 = vector.load %arg4[%c0_17, %c0_18] : memref<8x2xf32, #tpu.memory_space<vmem>>, vector<8x2xf32>
    tpu.vector_store %arg4[%c0_17, %c0_18], %26 {strides = array<i32>} : memref<8x2xf32, #tpu.memory_space<vmem>>, vector<8x2xf32>,
    return
  }
  func.func @transform_0(%arg0: i32) -> (i32, i32) {
    %c0_i32 = arith.constant 0 : i32
    %c0_i32_0 = arith.constant 0 : i32
    return %arg0, %c0_i32 : i32, i32
  }
  func.func @transform_1(%arg0: i32) -> (i32, i32) {
    %c0_i32 = arith.constant 0 : i32
    %c0_i32_0 = arith.constant 0 : i32
    %c0_i32_1 = arith.constant 0 : i32
    return %c0_i32, %c0_i32_0 : i32, i32
  }
  func.func @transform_2(%arg0: i32) -> (i32, i32) {
    %c0_i32 = arith.constant 0 : i32
    %c0_i32_0 = arith.constant 0 : i32
    %c0_i32_1 = arith.constant 0 : i32
    return %c0_i32, %c0_i32_0 : i32, i32
  }
  func.func @transform_3(%arg0: i32) -> (i32, i32) {
    %c0_i32 = arith.constant 0 : i32
    %c0_i32_0 = arith.constant 0 : i32
    return %arg0, %c0_i32 : i32, i32
  }
}

</mosaic_0001>

<bundles_post_ra>
// kernel: mlp_forward.1
= control target key start
LH: loop header
LB: loop body
LE: loop exit
PB: predicated region body
PF: predicated region fallthrough
CT: control target
= control target key end

     0   :  { %v430_v0 = vmov 0.0|0.0   ;;  %vm28_vm0 = vcmask 1042432   ;;  %vm431_vm1 = vmmov 0   ;;  %v432_v6 = vmov 0.0   ;;  %s502_s1 = inlined_call_operand.vmem [shape: f32[64,16], index: 1, kind: input, shape index: {}]   ;;  %s503_s0 = inlined_call_operand.vmem [shape: f32[8,27], index: 0, kind: input, shape index: {}]   ;;  %s504_s2 = inlined_call_operand.vmem [shape: f32[4,16], index: 2, kind: input, shape index: {}]   ;;  %s505_s3 = inlined_call_operand.vmem [shape: f32[8,2], index: 3, kind: output, shape index: {}]  }
   0x1   :  { %415 = vmatprep.subr.bf16.mxu0 %v430_v0  ;;  %v15_v1 = vld [vmem:[%s502_s1] sm:$0xff]  ;;  %v16_v2 = vld [vmem:[%s502_s1 + $0x8] sm:$0xff]  ;;  %v17_v3 = vld [vmem:[%s502_s1 + $0x10] sm:$0xff]  ;;  %422 = vmatprep.subr.bf16.mxu1 %v430_v0  ;;  %vm433_vm2 = vmmov 1   ;;  %vm24_vm4 = vcmask 220160   ;;  %vm114_vm5 = vcmask 1044480  }
   0x2   :  { %v416_v4 = vpack.c.bf16 %v16_v2, %v15_v1  ;;  %v18_v5 = vld [vmem:[%s502_s1 + $0x18] sm:$0x7]  ;;  %395 = vmatprep.mubr.msk.f32.mxu0 %vm431_vm1, %v432_v6  ;;  %402 = vmatprep.mubr.msk.f32.mxu1 %vm431_vm1, %v432_v6  ;;  %vm420_vm3 = vmpackc.low %vm28_vm0, %vm433_vm2  ;;  %v14_v8 = vld [vmem:[%s503_s0] sm:$0xff]  ;;  %vm110_vm7 = vcmask 105472   ;;  %vm199_vm8 = vcmask 1045504   ;;  %vm195_vm9 = vcmask 48128  }
   0x3   :  { %v419_v7 = vpack.c.bf16 %v18_v5, %v17_v3  ;;  %v103_v9 = vld [vmem:[%s502_s1 + $0x20] sm:$0xff]  ;;  %v104_v10 = vld [vmem:[%s502_s1 + $0x28] sm:$0x1f]  ;;  %vm424_vm6 = vmpackc.low %vm114_vm5, %vm433_vm2  ;;  %vm280_vm10 = vcmask 23552   ;;  %vm357_vm11 = vcmask 15360  }
   0x4   :  { %417 = vmatpush3.bf16.msra.mxu0 %v416_v4  ;;  %v423_v11 = vpack.c.bf16 %v104_v10, %v103_v9  ;;  %v363_v12 = vld [vmem:[%s504_s2] ss:$0 sm:$0xff]  ;;  %v189_v17 = vld [vmem:[%s502_s1 + $0x30] sm:$0x3f]  ;;  %v366_v18 = vld [vmem:[%s504_s2 + $0x1] ss:$0 sm:$0xff] }
   0x5   :  { %418 = vmatprep.subr.bf16.mxu0 %v430_v0  ;;  %v274_v23 = vld [vmem:[%s502_s1 + $0x38] sm:$0x7]  ;;  %v369_v24 = vld [vmem:[%s504_s2 + $0x2] ss:$0 sm:$0xff]  ;;  %v372_v29 = vld [vmem:[%s504_s2 + $0x3] ss:$0 sm:$0xff] }
   0x6   :  { %425 = vmatpush3.bf16.msk.msra.mxu1 %vm424_vm6, %v423_v11 }
   0x7   :  { %405 = vmatprep.subr.mxu1 %v432_v6 }
   0x8   :  { %421 = vmatpush3.bf16.msk.msra.mxu0 %vm420_vm3, %v419_v7 }
   0x9   :  { %410 = vmatprep.subr.mxu0 %v432_v6 }
   0xb   :  { %396 = vmatmul.mubr.msk.f32.vlgmr.msra.gmra.mrb[0].mxu0 %vm24_vm4, %v14_v8 }
   0xc   :  { %412 = vmatprep.mubr.msk.f32.mxu0 %vm431_vm1, %v432_v6  ;;  %411 = vmatpush3.msk.msra.mxu0 %vm28_vm0, %v274_v23 }
  0xde   :  { %v98_v13 = vpop.f32.mrb[0].mxu0 }
  0xdf   :  { %v99_v14 = vadd.f32 %v363_v12, %v98_v13  ;;  %v397_v15 = vpop.f32.mrb[1].mxu0 }
  0xe1   :  { %v102_v16 = vmax.f32 %v99_v14, 0.0 }
  0xe3   :  { %403 = vmatmul.mubr.msk.f32.vlgmr.msra.gmra.mrb[0].mxu1 %vm110_vm7, %v102_v16 }
  0xe4   :  { %407 = vmatprep.mubr.msk.f32.mxu1 %vm431_vm1, %v432_v6  ;;  %406 = vmatpush3.msk.msra.mxu1 %vm199_vm8, %v189_v17 }
 0x1b6   :  { %v184_v19 = vpop.f32.mrb[0].mxu1 }
 0x1b7   :  { %v185_v20 = vadd.f32 %v366_v18, %v184_v19  ;;  %v404_v21 = vpop.f32.mrb[1].mxu1 }
 0x1b9   :  { %v188_v22 = vmax.f32 %v185_v20, 0.0 }
 0x1bb   :  { %408 = vmatmul.mubr.msk.f32.vlgmr.msra.gmra.mrb[2].mxu1 %vm195_vm9, %v188_v22 }
 0x28e   :  { %v269_v25 = vpop.f32.mrb[2].mxu1 }
 0x28f   :  { %v270_v26 = vadd.f32 %v369_v24, %v269_v25  ;;  %v409_v27 = vpop.f32.mrb[3].mxu1 }
 0x291   :  { %v273_v28 = vmax.f32 %v270_v26, 0.0 }
 0x293   :  { %413 = vmatmul.mubr.msk.f32.vlgmr.msra.gmra.mrb[2].mxu0 %vm280_vm10, %v273_v28 }
 0x366   :  { %v353_v30 = vpop.f32.mrb[2].mxu0 }
 0x367   :  { %v354_v31 = vadd.f32 %v372_v29, %v353_v30  ;;  %v414_v32 = vpop.f32.mrb[3].mxu0 }
 0x369   :  { %358 = vst.msk [vmem:[%s505_s3] sm:$0xff] %vm357_vm11, %v354_v31 }

</bundles_post_ra>
